<compile_context>
chip_gen: v6e
topology: v6e:2x2x1
jax: 0.10.0
libtpu: 0.0.40
codegen_flags: <defaults>
</compile_context>

<pallas_src>
import jax
import jax.numpy as jnp
from jax import lax
from jax.experimental import pallas as pl
from jax.experimental.pallas import tpu as pltpu


# Double-buffered (input + output) block working set kept well under the
# smallest physical VMEM (v7x: 64 MiB) with room for pipeline buffers.
_VMEM_WORKING_SET_BUDGET = 16 * 1024 * 1024
# Explicit scoped-VMEM limit: above v5e's 16 MiB / v6e-v7x's 32 MiB defaults,
# safely below every generation's physical VMEM.
_VMEM_LIMIT_BYTES = 48 * 1024 * 1024


def _sublane_unit(dtype):
    """Sublane tiling unit: 8 for 4-byte, 16 for 2-byte, 32 for 1-byte dtypes."""
    itemsize = jnp.dtype(dtype).itemsize
    return max(8, 32 // itemsize)


def _pick_tile(dim, unit, cap):
    """Pick a block extent along one axis.

    Preference order:
      1. the full extent (always a legal block shape) when it fits `cap`,
      2. the largest multiple of `unit` that divides `dim` and is <= cap,
      3. the largest multiple of `unit` <= cap; the ragged tail is handled by
         a pl.cdiv grid (plus in-kernel masking where the values matter).
    """
    cap = int(min(cap, dim))
    if dim <= cap:
        return int(dim)
    cap = max(cap, unit)
    t = (cap // unit) * unit
    while t >= unit:
        if dim % t == 0:
            return int(t)
        t -= unit
    return int((cap // unit) * unit)


def _make_tracked_relu_kernel(batch, tile_b, ragged_b):
    """ReLU + per-neuron partial sum for one (tile_b, tile_n) block.

    Grid = (N-tiles, B-tiles); both axes parallel (each step writes its own
    disjoint y block and its own partial-sum row)."""

    def kernel(x_ref, y_ref, part_ref):
        a = jnp.maximum(x_ref[...], jnp.zeros((), x_ref.dtype))
        y_ref[...] = a

        if ragged_b:
            # Last batch block may contain out-of-bounds (garbage) rows; mask
            # them out of the sum.  (Their y writes are dropped by Pallas.)
            b = pl.program_id(1)
            rows = lax.broadcasted_iota(jnp.int32, a.shape, 0)
            a = jnp.where(rows < (batch - b * tile_b), a,
                          jnp.zeros((), a.dtype))

        # Fold the f32 accumulation into the cross-sublane reduce itself so no
        # full-block f32 temp is materialized (bf16-safe precision).
        part_ref[...] = jnp.sum(a, axis=0, dtype=jnp.float32).reshape(
            part_ref.shape)

    return kernel


def _relu_kernel(x_ref, y_ref):
    y_ref[...] = jnp.maximum(x_ref[...], jnp.zeros((), x_ref.dtype))


def tracked_act_func_forward(x, *, tile_n=None, tile_b=None, track=True):
    """ReLU (the module's act_func) via a Pallas kernel.

    Returns:
      track=True : (activations, activation_summer_delta) where `activations`
                   matches the PyTorch forward() return value and the delta is
                   the per-neuron sum count_dead_neurons would accumulate.
      track=False: activations only (inference path, no tracking).
    """
    # TODO(synk): the module's act_func is generic; this kernel implements the
    # ReLU case (the one the tracking logic special-cases).
    B, N = x.shape
    itemsize = jnp.dtype(x.dtype).itemsize
    unit_b = _sublane_unit(x.dtype)

    # --- tile selection: prefer full contiguous rows (tile_n == N) ----------
    # Working set ~= double-buffered input + output blocks:
    #   4 * tile_b * tile_n * itemsize.
    if tile_n is None:
        if 4 * unit_b * N * itemsize <= _VMEM_WORKING_SET_BUDGET:
            tile_n = N  # one contiguous HBM transfer per block
        else:
            cap_n = max(128, _VMEM_WORKING_SET_BUDGET // (4 * unit_b * itemsize))
            tile_n = _pick_tile(N, 128, cap_n)
    if tile_b is None:
        max_b = max(unit_b, _VMEM_WORKING_SET_BUDGET // (4 * tile_n * itemsize))
        tile_b = _pick_tile(B, unit_b, max_b)

    grid_n = pl.cdiv(N, tile_n)
    grid_b = pl.cdiv(B, tile_b)
    grid = (grid_n, grid_b)
    ragged_b = (B % tile_b) != 0

    bytes_accessed = 2 * B * N * itemsize + (grid_b * N * 4 if track else 0)
    cost = pl.CostEstimate(flops=B * N, transcendentals=0,
                           bytes_accessed=bytes_accessed)

    x_spec = pl.BlockSpec((tile_b, tile_n), lambda j, b: (b, j))
    y_spec = pl.BlockSpec((tile_b, tile_n), lambda j, b: (b, j))
    params = pltpu.CompilerParams(
        dimension_semantics=("parallel", "parallel"),
        vmem_limit_bytes=_VMEM_LIMIT_BYTES,
    )

    if not track:
        return pl.pallas_call(
            _relu_kernel,
            out_shape=jax.ShapeDtypeStruct((B, N), x.dtype),
            grid_spec=pltpu.PrefetchScalarGridSpec(
                num_scalar_prefetch=0,
                grid=grid,
                in_specs=[x_spec],
                out_specs=y_spec,
            ),
            compiler_params=params,
            cost_estimate=cost,
        )(x)

    # Per-batch-tile partial sums: each grid step writes its own (1, 1, tile_n)
    # row, so no cross-iteration dependency (both grid axes stay parallel and
    # v7x's two TensorCores can shard the batch axis).
    part_spec = pl.BlockSpec((1, 1, tile_n), lambda j, b: (b, 0, j))
    y, partials = pl.pallas_call(
        _make_tracked_relu_kernel(B, tile_b, ragged_b),
        out_shape=(
            jax.ShapeDtypeStruct((B, N), x.dtype),
            jax.ShapeDtypeStruct((grid_b, 1, N), jnp.float32),
        ),
        grid_spec=pltpu.PrefetchScalarGridSpec(
            num_scalar_prefetch=0,
            grid=grid,
            in_specs=[x_spec],
            out_specs=[y_spec, part_spec],
        ),
        compiler_params=params,
        cost_estimate=cost,
    )(x)

    # Tiny final reduction over grid_b partial rows (negligible vs. the stream).
    summ = jnp.sum(partials, axis=(0, 1))
    return y, summ


if __name__ == "__main__":
    key = jax.random.PRNGKey(0)

    # 1) Module-consistent small shape (batch, nneurons), f32, auto tiling
    #    -> full-row contiguous blocks (tile_n = N).
    B, N = 16, 256
    x = jax.random.normal(key, (B, N), dtype=jnp.float32)
    y_ref = jnp.maximum(x, 0.0)
    summ_ref = jnp.sum(y_ref, axis=0)

    y, summ = tracked_act_func_forward(x)
    jax.block_until_ready((y, summ))
    assert jnp.allclose(y, y_ref, atol=1e-6), "activation mismatch"
    assert jnp.allclose(summ, summ_ref, atol=1e-4), "activation_summer mismatch"

    # 2) Ragged tiling on both axes (B=20 with tile_b=8, N=192 with tile_n=128)
    #    -> pl.cdiv grid + in-kernel masking of the batch tail.
    B2, N2 = 20, 192
    x2 = jax.random.normal(jax.random.PRNGKey(1), (B2, N2), dtype=jnp.float32)
    y2_ref = jnp.maximum(x2, 0.0)
    summ2_ref = jnp.sum(y2_ref, axis=0)
    y2, summ2 = tracked_act_func_forward(x2, tile_n=128, tile_b=8)
    jax.block_until_ready((y2, summ2))
    assert jnp.allclose(y2, y2_ref, atol=1e-6), "activation mismatch (ragged)"
    assert jnp.allclose(summ2, summ2_ref, atol=1e-4), "summ mismatch (ragged)"

    # 3) bf16 activations, auto tiling (dtype-aware sublane unit, f32-folded sum).
    x3 = jax.random.normal(jax.random.PRNGKey(2), (32, 256),
                           dtype=jnp.float32).astype(jnp.bfloat16)
    y3_ref = jnp.maximum(x3, jnp.zeros((), jnp.bfloat16))
    summ3_ref = jnp.sum(y3_ref.astype(jnp.float32), axis=0)
    y3, summ3 = tracked_act_func_forward(x3)
    jax.block_until_ready((y3, summ3))
    assert jnp.array_equal(y3, y3_ref), "activation mismatch (bf16)"
    assert jnp.allclose(summ3, summ3_ref, atol=1e-3), "summ mismatch (bf16)"

    # 4) Inference path: tracking disabled (no summ output).
    y4 = tracked_act_func_forward(x, track=False)
    jax.block_until_ready(y4)
    assert jnp.allclose(y4, y_ref, atol=1e-6), "activation mismatch (no track)"

    # TODO(synk): wandb logging, epoch bookkeeping and the self.neuron_acts
    # clone in forward() are host-side side effects with no kernel equivalent;
    # they do not affect the returned tensor and are omitted.
    print("KERNEL_OK")
</pallas_src>

<mosaic_0001>
module attributes {stable_mosaic.version = 11 : i64} {
  func.func @kernel(%arg0: i32, %arg1: i32, %arg2: memref<16x256xf32, #tpu.memory_space<vmem>>, %arg3: memref<16x256xf32, #tpu.memory_space<vmem>>, %arg4: memref<1x1x256xf32, #tpu.memory_space<vmem>>) attributes {dimension_semantics = [#tpu.dimension_semantics<parallel>, #tpu.dimension_semantics<parallel>], iteration_bounds = array<i64: 1, 1>, scalar_prefetch = 0 : i64, scratch_operands = 0 : i64, tpu.core_type = #tpu.core_type<tc>, window_params = [{transform_indices = @transform_0, window_bounds = array<i64: 16, 256>}, {transform_indices = @transform_1, window_bounds = array<i64: 16, 256>}, {transform_indices = @transform_2, window_bounds = array<i64: 1, 1, 256>}]} {
    %c0 = arith.constant 0 : index
    %c0_0 = arith.constant 0 : index
    %0 = vector.load %arg2[%c0, %c0_0] : memref<16x256xf32, #tpu.memory_space<vmem>>, vector<16x256xf32>
    %cst = arith.constant 0.000000e+00 : f32
    %1 = vector.broadcast %cst : f32 to vector<16x256xf32>
    %2 = arith.maximumf %0, %1 : vector<16x256xf32>
    %c0_1 = arith.constant 0 : index
    %c0_2 = arith.constant 0 : index
    %3 = vector.load %arg3[%c0_1, %c0_2] : memref<16x256xf32, #tpu.memory_space<vmem>>, vector<16x256xf32>
    tpu.vector_store %arg3[%c0_1, %c0_2], %2 {strides = array<i32>} : memref<16x256xf32, #tpu.memory_space<vmem>>, vector<16x256xf32>,
    %cst_3 = arith.constant dense<0.000000e+00> : vector<256xf32>
    %4 = vector.multi_reduction <add>, %2, %cst_3 [0] : vector<16x256xf32> to vector<256xf32>
    %5 = vector.shape_cast %4 : vector<256xf32> to vector<1x1x256xf32>
    %c0_4 = arith.constant 0 : index
    %c0_5 = arith.constant 0 : index
    %c0_6 = arith.constant 0 : index
    %6 = vector.load %arg4[%c0_4, %c0_5, %c0_6] : memref<1x1x256xf32, #tpu.memory_space<vmem>>, vector<1x1x256xf32>
    tpu.vector_store %arg4[%c0_4, %c0_5, %c0_6], %5 {strides = array<i32>} : memref<1x1x256xf32, #tpu.memory_space<vmem>>, vector<1x1x256xf32>,
    return
  }
  func.func @transform_0(%arg0: i32, %arg1: i32) -> (i32, i32) {
    %c0_i32 = arith.constant 0 : i32
    return %arg1, %arg0 : i32, i32
  }
  func.func @transform_1(%arg0: i32, %arg1: i32) -> (i32, i32) {
    %c0_i32 = arith.constant 0 : i32
    return %arg1, %arg0 : i32, i32
  }
  func.func @transform_2(%arg0: i32, %arg1: i32) -> (i32, i32, i32) {
    %c0_i32 = arith.constant 0 : i32
    %c0_i32_0 = arith.constant 0 : i32
    return %arg1, %c0_i32, %arg0 : i32, i32, i32
  }
}

</mosaic_0001>

<bundles_post_ra>
// kernel: tpu_custom_call.1
= control target key start
LH: loop header
LB: loop body
LE: loop exit
PB: predicated region body
PF: predicated region fallthrough
CT: control target
= control target key end

     0   :  { %8 = vsyncpa [#allocation3], 0  ;;  %s214_s0 = inlined_call_operand.hbm [shape: f32[16,256], index: 0, kind: input, shape index: {}]   ;;  %s215_s1 = inlined_call_operand.hbm [shape: f32[16,256], index: 1, kind: output, shape index: {0}]   ;;  %s216_s2 = inlined_call_operand.hbm [shape: f32[1,1,256], index: 2, kind: output, shape index: {1}]  }
   0x1   :  { %9 = vsyncpa [#allocation4], 0 }
   0x2   :  { %10 = vsyncpa [#allocation7], 0  ;;  %s178_s9 = smov [#allocation2]  }
   0x3   :  { %s16_s10 = sshll.u32 %s178_s9, 4  ;;  %s17_s10 = int_to_ptr.vmem [resolvable:$true] %s16_s10 }
   0x4   :  { %s120_s11 = scalar_lea.vmem %s17_s10, 512  ;;  %p125_p1 = scmp.lt.s32.totalorder %s17_s10, %s17_s10 }
   0x5   :  { %p121_p0 = scmp.ne.s32.totalorder %s17_s10, %s120_s11  ;;  %p126_p2 = scmp.lt.s32.totalorder %s120_s11, %s120_s11 }
   0x7   :  { %p127_p3 = por %p126_p2, %p125_p1 }
   0x9   :  { %p128_p4 = pnand %p127_p3, %p121_p0 }
   0xb   :  { %131 = shalt.err (!%p128_p4)
}
   0xc   :  { %s179_s12 = smov 256   ;;  %s180_s13 = smov 16  }
   0xd   :  { %22 = dma.hbm_to_vmem [thread:$0]  %s214_s0, 512, %s17_s10, [#allocation3], %s179_s12, %s179_s12, %s180_s13  }
   0xe   :  { %172 = dma.done.wait [#allocation3], 512  }
   0xf   :  { %173 = vsyncadd [#allocation3], 4294966784  ;;  %s181_s16 = smov [#allocation5]   ;;  %v26_v0 = vld [vmem:[#allocation2] sm:$0xff]  ;;  %v27_v1 = vld [vmem:[#allocation2 + $0x8] sm:$0xff] }
  0x10   :  { %s80_s17 = sshll.u32 %s181_s16, 4  ;;  %v28_v2 = vld [vmem:[#allocation2 + $0x10] sm:$0xff]  ;;  %v30_v3 = vmax.f32 %v26_v0, 0.0  ;;  %v31_v4 = vmax.f32 %v27_v1, 0.0  ;;  %v29_v6 = vld [vmem:[#allocation2 + $0x18] sm:$0xff]  ;;  %s81_s17 = int_to_ptr.vmem [resolvable:$true] %s80_s17 }
  0x11   :  { %v32_v5 = vmax.f32 %v28_v2, 0.0  ;;  %v33_v7 = vmax.f32 %v29_v6, 0.0  ;;  %s132_s0 = scalar_lea.vmem %s81_s17, 512  ;;  %p137_p6 = scmp.lt.s32.totalorder %s81_s17, %s81_s17 }
  0x12   :  { %34 = vst [vmem:[#allocation5] sm:$0xff] %v30_v3  ;;  %35 = vst [vmem:[#allocation5 + $0x8] sm:$0xff] %v31_v4  ;;  %p133_p5 = scmp.ne.s32.totalorder %s81_s17, %s132_s0  ;;  %p138_p7 = scmp.lt.s32.totalorder %s132_s0, %s132_s0 }
  0x13   :  { %36 = vst [vmem:[#allocation5 + $0x10] sm:$0xff] %v32_v5  ;;  %v38_v8 = vadd.f32 %v32_v5, %v30_v3  ;;  %37 = vst [vmem:[#allocation5 + $0x18] sm:$0xff] %v33_v7  ;;  %v45_v9 = vadd.f32 %v33_v7, %v31_v4 }
  0x14   :  { %p139_p8 = por %p138_p7, %p137_p6 }
  0x15   :  { %v39_v10 = vrot.slane %v38_v8, 4 }
  0x16   :  { %p140_p9 = pnand %p139_p8, %p133_p5 }
  0x18   :  { %143 = shalt.err (!%p140_p9)
}
  0x19   :  { %86 = dma.vmem_to_hbm [thread:$0]  %s81_s17, 512, %s215_s1, [#allocation4], %s179_s12, %s179_s12, %s180_s13   ;;  %v46_v11 = vrot.slane %v45_v9, 4  ;;  %v40_v12 = vadd.f32 %v39_v10, %v38_v8  ;;  %v182_v14 = vmov 1966171168   ;;  %v58_v16 = vlaneseq }
  0x1a   :  { %v56_v15 = vunpack.c.l.s4 %v182_v14  ;;  %s183_s20 = smov [#allocation6]  }
  0x1b   :  { %v47_v13 = vadd.f32 %v46_v11, %v45_v9  ;;  %v41_v17 = vrot.slane %v40_v12, 2  ;;  %v59_v22 = vshrl.u32 %v58_v16, 7  ;;  %s93_s1 = sshll.u32 %s183_s20, 4  ;;  %vm72_vm0 = vcmp.lt.s32.totalorder %v58_v16, 256  ;;  %s94_s1 = int_to_ptr.vmem [resolvable:$true] %s93_s1 }
  0x1c   :  { %v57_v21 = vunpack.c.0.s8 %v56_v15  ;;  %s152_s21 = scalar_lea.vmem %s94_s1, 32  ;;  %p157_p11 = scmp.lt.s32.totalorder %s94_s1, %s94_s1 }
  0x1d   :  { %v48_v18 = vrot.slane %v47_v13, 2  ;;  %v42_v19 = vadd.f32 %v41_v17, %v40_v12  ;;  %p153_p10 = scmp.ne.s32.totalorder %s94_s1, %s152_s21  ;;  %p158_p12 = scmp.lt.s32.totalorder %s152_s21, %s152_s21 }
  0x1e   :  { %v60_v27 = vsub.s32 %v57_v21, %v59_v22 }
  0x1f   :  { %v49_v20 = vadd.f32 %v48_v18, %v47_v13  ;;  %v43_v23 = vrot.slane %v42_v19, 1  ;;  %p159_p13 = por %p158_p12, %p157_p11 }
  0x21   :  { %v50_v24 = vrot.slane %v49_v20, 1  ;;  %v44_v25 = vadd.f32 %v43_v23, %v42_v19  ;;  %p160_p0 = pnand %p159_p13, %p153_p10 }
  0x23   :  { %v51_v26 = vadd.f32 %v50_v24, %v49_v20 }
  0x25   :  { %v54_v28 = vcombine.low %v44_v25, %v51_v26 }
  0x27   :  { %v61_v29 = vrot.slane %v54_v28, %v60_v27 }
  0x29   :  { %v68_v30 = vrot.slane %v61_v29, %v60_v27 }
  0x2b   :  { %74 = vst.msk [vmem:[#allocation6] sm:$0x3] %vm72_vm0, %v68_v30 }
  0x2c   :  { %163 = shalt.err (!%p160_p0)
}
  0x2d   :  { %96 = dma.vmem_to_hbm [thread:$0]  %s94_s1, 32, %s216_s2, [#allocation7]  }
  0x2e   :  { %174 = dma.done.wait [#allocation4], 512  }
  0x2f   :  { %175 = vsyncadd [#allocation4], 4294966784 }
  0x30   :  { %176 = dma.done.wait [#allocation7], 32  }
  0x31   :  { %177 = vsyncadd [#allocation7], 4294967264 }
  0x32   :  { %103 = vsyncpa [#allocation3], 1 }
  0x33   :  { %104 = vsyncpa [#allocation4], 1 }
  0x34   :  { %105 = vsyncpa [#allocation7], 1 }

</bundles_post_ra>
